<compile_context>
chip_gen: v5e
topology: v5e:2x2
jax: 0.10.0
libtpu: 0.0.40
codegen_flags: <defaults>
</compile_context>

<pallas_src>
import jax
import jax.numpy as jnp
from jax.experimental import pallas as pl
from jax.experimental.pallas import tpu as pltpu


def _round_up(x, m):
    return ((x + m - 1) // m) * m


def marginnet_fused_kernel(x_ref, w_ref, b_ref, mu_ref, l_ref):
    # One MXU matmul covers both heads: (TB, D) @ (D, L+1) with f32
    # accumulation and an f32 bias add.  Fused-weight layout: columns 0..L-1
    # are the L head (lane-aligned slice -> cheap masked store), column L is
    # the mu head (single-lane extract).  Split here so the wrapper never has
    # to re-slice the output (no extra HBM pass).
    L = l_ref.shape[-1]
    acc = jnp.dot(x_ref[...], w_ref[...], preferred_element_type=jnp.float32)
    acc = acc + b_ref[...].astype(jnp.float32)
    l_ref[...] = acc[:, :L].astype(l_ref.dtype)
    mu_ref[...] = acc[:, L:L + 1].astype(mu_ref.dtype)


def marginnet_forward(x, w_mu, b_mu, w_l, b_l, *, block_b=8192, use_bf16=False):
    """MarginNet forward.

    x:    (B, D)
    w_mu: (1, D), b_mu: (1,)     -- PyTorch nn.Linear layout (out, in)
    w_l:  (L, D), b_l: (L,)
    returns (mu, L) with shapes (B, 1) and (B, L).

    use_bf16=True casts x and the fused weight to bfloat16 for the MXU
    (f32 accumulate + f32 bias kept); faster but ~1e-2 accuracy.
    """
    B, D = x.shape
    L = w_l.shape[0]
    Lp1 = L + 1

    # Fuse both heads into one (D, L+1) weight: cols 0..L-1 = L head, col L = mu.
    w_fused = jnp.concatenate([w_l, w_mu], axis=0).T            # (D, L+1)
    b_fused = jnp.concatenate([b_l, b_mu], axis=0)[None, :]     # (1, L+1)
    b_fused = b_fused.astype(jnp.float32)

    if use_bf16:
        x_in = x.astype(jnp.bfloat16)
        w_fused = w_fused.astype(jnp.bfloat16)
    else:
        x_in = x
    out_dtype = x.dtype

    # Batch tile: sublane-aligned (multiple of 8), capped at block_b.
    TB = _round_up(min(block_b, _round_up(B, 8)), 8)
    grid = (pl.cdiv(B, TB),)   # ragged last block if TB does not divide B

    in_itemsize = jnp.dtype(x_in.dtype).itemsize
    out_itemsize = jnp.dtype(out_dtype).itemsize
    cost = pl.CostEstimate(
        flops=2 * B * D * Lp1,
        transcendentals=0,
        bytes_accessed=(x_in.size * in_itemsize
                        + w_fused.size * in_itemsize
                        + b_fused.size * 4
                        + B * Lp1 * out_itemsize),
    )

    mu, l_out = pl.pallas_call(
        marginnet_fused_kernel,
        out_shape=(
            jax.ShapeDtypeStruct((B, 1), out_dtype),
            jax.ShapeDtypeStruct((B, L), out_dtype),
        ),
        grid_spec=pltpu.PrefetchScalarGridSpec(
            num_scalar_prefetch=0,
            grid=grid,
            in_specs=[
                pl.BlockSpec((TB, D), lambda i: (i, 0)),    # x: streamed batch tiles
                pl.BlockSpec((D, Lp1), lambda i: (0, 0)),   # fused W: VMEM-resident
                pl.BlockSpec((1, Lp1), lambda i: (0, 0)),   # fused bias: VMEM-resident
            ],
            out_specs=[
                pl.BlockSpec((TB, 1), lambda i: (i, 0)),    # mu
                pl.BlockSpec((TB, L), lambda i: (i, 0)),    # L
            ],
        ),
        compiler_params=pltpu.CompilerParams(
            dimension_semantics=("parallel",),  # independent batch tiles -> megacore
        ),
        cost_estimate=cost,
    )(x_in, w_fused, b_fused)

    return mu, l_out


if __name__ == "__main__":
    # Shapes implied by the module: x is (batch, param_dim); mu head -> 1,
    # L head -> L_param_dim (default 32).
    batch = 8
    param_dim = 32
    L_param_dim = 32

    key = jax.random.PRNGKey(0)
    kx, kwm, kbm, kwl, kbl = jax.random.split(key, 5)

    x = jax.random.normal(kx, (batch, param_dim), dtype=jnp.float32)

    # Deterministic "nn.Linear"-style init (uniform in +/- 1/sqrt(fan_in)).
    bound = 1.0 / (param_dim ** 0.5)
    w_mu = jax.random.uniform(kwm, (1, param_dim), jnp.float32, -bound, bound)
    b_mu = jax.random.uniform(kbm, (1,), jnp.float32, -bound, bound)
    w_l = jax.random.uniform(kwl, (L_param_dim, param_dim), jnp.float32, -bound, bound)
    b_l = jax.random.uniform(kbl, (L_param_dim,), jnp.float32, -bound, bound)

    fwd = jax.jit(marginnet_forward, static_argnames=("block_b", "use_bf16"))

    # --- small-shape f32 check (single tile) ---
    mu, L = fwd(x, w_mu, b_mu, w_l, b_l)
    jax.block_until_ready((mu, L))
    mu_ref = x @ w_mu.T + b_mu
    L_ref = x @ w_l.T + b_l
    assert mu.shape == (batch, 1) and L.shape == (batch, L_param_dim)
    assert jnp.allclose(mu, mu_ref, atol=1e-5), "mu mismatch"
    assert jnp.allclose(L, L_ref, atol=1e-5), "L mismatch"

    # --- multi-tile + ragged last block (B not a multiple of the tile) ---
    batch2 = 1037  # block_b=512 -> grid of 3, last block only 13 valid rows
    x2 = jax.random.normal(jax.random.PRNGKey(1), (batch2, param_dim), jnp.float32)
    mu2, L2 = fwd(x2, w_mu, b_mu, w_l, b_l, block_b=512)
    jax.block_until_ready((mu2, L2))
    assert mu2.shape == (batch2, 1) and L2.shape == (batch2, L_param_dim)
    assert jnp.allclose(mu2, x2 @ w_mu.T + b_mu, atol=1e-4), "mu mismatch (tiled)"
    assert jnp.allclose(L2, x2 @ w_l.T + b_l, atol=1e-4), "L mismatch (tiled)"

    # --- bf16 MXU-operand fast path (f32 accumulate; relaxed tolerance) ---
    mu3, L3 = fwd(x2, w_mu, b_mu, w_l, b_l, block_b=512, use_bf16=True)
    jax.block_until_ready((mu3, L3))
    assert mu3.shape == (batch2, 1) and L3.shape == (batch2, L_param_dim)
    assert jnp.allclose(mu3, x2 @ w_mu.T + b_mu, atol=5e-2), "mu mismatch (bf16)"
    assert jnp.allclose(L3, x2 @ w_l.T + b_l, atol=5e-2), "L mismatch (bf16)"

    print("KERNEL_OK")
</pallas_src>

<mosaic_0001>
module attributes {stable_mosaic.version = 11 : i64} {
  func.func @marginnet_fused_kernel(%arg0: i32, %arg1: memref<8x32xf32, #tpu.memory_space<vmem>>, %arg2: memref<32x33xf32, #tpu.memory_space<vmem>>, %arg3: memref<1x33xf32, #tpu.memory_space<vmem>>, %arg4: memref<8x1xf32, #tpu.memory_space<vmem>>, %arg5: memref<8x32xf32, #tpu.memory_space<vmem>>) attributes {dimension_semantics = [#tpu.dimension_semantics<parallel>], iteration_bounds = array<i64: 1>, scalar_prefetch = 0 : i64, scratch_operands = 0 : i64, tpu.core_type = #tpu.core_type<tc>, window_params = [{transform_indices = @transform_0, window_bounds = array<i64: 8, 32>}, {pipeline_mode = #tpu.pipeline_mode<synchronous>, transform_indices = @transform_1, window_bounds = array<i64: 32, 33>}, {pipeline_mode = #tpu.pipeline_mode<synchronous>, transform_indices = @transform_2, window_bounds = array<i64: 1, 33>}, {transform_indices = @transform_3, window_bounds = array<i64: 8, 1>}, {transform_indices = @transform_4, window_bounds = array<i64: 8, 32>}]} {
    %c0 = arith.constant 0 : index
    %c0_0 = arith.constant 0 : index
    %0 = vector.load %arg1[%c0, %c0_0] : memref<8x32xf32, #tpu.memory_space<vmem>>, vector<8x32xf32>
    %c0_1 = arith.constant 0 : index
    %c0_2 = arith.constant 0 : index
    %1 = vector.load %arg2[%c0_1, %c0_2] : memref<32x33xf32, #tpu.memory_space<vmem>>, vector<32x33xf32>
    %cst = arith.constant dense<0.000000e+00> : vector<8x33xf32>
    %2 = tpu.matmul %0, %1, %cst {dimension_numbers = #tpu.dot_dimension_numbers<[1], [0], [0], [1], [0, 0, 1, 1], [], []>} : vector<8x32xf32>, vector<32x33xf32>, vector<8x33xf32> -> vector<8x33xf32>
    %c0_3 = arith.constant 0 : index
    %c0_4 = arith.constant 0 : index
    %3 = vector.load %arg3[%c0_3, %c0_4] : memref<1x33xf32, #tpu.memory_space<vmem>>, vector<1x33xf32>
    %4 = vector.broadcast %3 : vector<1x33xf32> to vector<8x33xf32>
    %5 = arith.addf %2, %4 : vector<8x33xf32>
    %6 = vector.extract_strided_slice %5 {offsets = [0, 0], sizes = [8, 32], strides = [1, 1]} : vector<8x33xf32> to vector<8x32xf32>
    %c0_5 = arith.constant 0 : index
    %c0_6 = arith.constant 0 : index
    %7 = vector.load %arg5[%c0_5, %c0_6] : memref<8x32xf32, #tpu.memory_space<vmem>>, vector<8x32xf32>
    tpu.vector_store %arg5[%c0_5, %c0_6], %6 {strides = array<i32>} : memref<8x32xf32, #tpu.memory_space<vmem>>, vector<8x32xf32>,
    %8 = vector.extract_strided_slice %5 {offsets = [0, 32], sizes = [8, 1], strides = [1, 1]} : vector<8x33xf32> to vector<8x1xf32>
    %c0_7 = arith.constant 0 : index
    %c0_8 = arith.constant 0 : index
    %9 = vector.load %arg4[%c0_7, %c0_8] : memref<8x1xf32, #tpu.memory_space<vmem>>, vector<8x1xf32>
    tpu.vector_store %arg4[%c0_7, %c0_8], %8 {strides = array<i32>} : memref<8x1xf32, #tpu.memory_space<vmem>>, vector<8x1xf32>,
    return
  }
  func.func @transform_0(%arg0: i32) -> (i32, i32) {
    %c0_i32 = arith.constant 0 : i32
    %c0_i32_0 = arith.constant 0 : i32
    return %arg0, %c0_i32 : i32, i32
  }
  func.func @transform_1(%arg0: i32) -> (i32, i32) {
    %c0_i32 = arith.constant 0 : i32
    %c0_i32_0 = arith.constant 0 : i32
    %c0_i32_1 = arith.constant 0 : i32
    return %c0_i32, %c0_i32_0 : i32, i32
  }
  func.func @transform_2(%arg0: i32) -> (i32, i32) {
    %c0_i32 = arith.constant 0 : i32
    %c0_i32_0 = arith.constant 0 : i32
    %c0_i32_1 = arith.constant 0 : i32
    return %c0_i32, %c0_i32_0 : i32, i32
  }
  func.func @transform_3(%arg0: i32) -> (i32, i32) {
    %c0_i32 = arith.constant 0 : i32
    %c0_i32_0 = arith.constant 0 : i32
    return %arg0, %c0_i32 : i32, i32
  }
  func.func @transform_4(%arg0: i32) -> (i32, i32) {
    %c0_i32 = arith.constant 0 : i32
    %c0_i32_0 = arith.constant 0 : i32
    return %arg0, %c0_i32 : i32, i32
  }
}

</mosaic_0001>

<bundles_post_ra>
// kernel: marginnet_forward.1
= control target key start
LH: loop header
LB: loop body
LE: loop exit
PB: predicated region body
PF: predicated region fallthrough
CT: control target
= control target key end

     0   :  { %s158_s0 = inlined_call_operand.vmem [shape: f32[8,32], index: 0, kind: input, shape index: {}]   ;;  %s159_s1 = inlined_call_operand.vmem [shape: f32[32,33], index: 1, kind: input, shape index: {}]   ;;  %s160_s2 = inlined_call_operand.vmem [shape: f32[1,33], index: 2, kind: input, shape index: {}]   ;;  %s161_s3 = inlined_call_operand.vmem [shape: f32[8,1], index: 3, kind: output, shape index: {0}]   ;;  %s162_s4 = inlined_call_operand.hbm [shape: f32[8,32], index: 4, kind: output, shape index: {1}]  }
   0x1   :  { %v21_v0 = vld [vmem:[%s159_s1 + $0x18] sm:$0xff]  ;;  %v20_v1 = vld [vmem:[%s159_s1 + $0x10] sm:$0xff]  ;;  %v19_v2 = vld [vmem:[%s159_s1 + $0x8] sm:$0xff] }
   0x2   :  { %42 = vmatpush.msra.mxu0 %v21_v0 }
   0x3   :  { %10 = vsyncpa [#allocation3], 0  ;;  %v18_v3 = vld [vmem:[%s159_s1] sm:$0xff]  ;;  %vm26_vm0 = vcmask 261120   ;;  %s107_s27 = smov [#allocation2]   ;;  %s66_s5 = sshll.u32 %s162_s4, 4  ;;  %s67_s5 = int_to_ptr.hbm [resolvable:$true] %s66_s5 }
   0x4   :  { %43 = vmatpush.msra.mxu0 %v20_v1  ;;  %v17_v4 = vld [vmem:[%s158_s0] sm:$0xff]  ;;  %s64_s28 = sshll.u32 %s107_s27, 4  ;;  %s108_s1 = smov 96   ;;  %vm55_vm1 = vcmask 7168   ;;  %s65_s28 = int_to_ptr.vmem [resolvable:$true] %s64_s28 }
   0x5   :  { %v80_v5 = vld [vmem:[%s160_s2] ss:$0 sm:$0xff] }
   0x6   :  { %44 = vmatpush.msra.mxu0 %v19_v2 }
   0x8   :  { %45 = vmatpush.msra.mxu0 %v18_v3 }
   0x9   :  { %77 = vmatmul.msk.f32.vlgmr.msra.gmra.mxu0 %vm26_vm0, %v17_v4 }
  0x86   :  { %v47_v6 = vpop.f32.mrf.mxu0 }
  0x87   :  { %v48_v7 = vadd.f32 %v80_v5, %v47_v6 }
  0x89   :  { %50 = vst.msk [vmem:[#allocation2] sm:$0xff] %vm26_vm0, %v48_v7  ;;  %52 = vrot.lane.b32.xlu0 %v48_v7, %s108_s1 }
  0x8a   :  { %69 = dma.vmem_to_hbm [thread:$0]  %s65_s28, 128, %s67_s5, [#allocation3]  }
  0xfb   :  { %v53_v8 = vpop.permute.xlu0 %52 }
  0xfc   :  { %56 = vst.msk [vmem:[%s161_s3] sm:$0xff] %vm55_vm1, %v53_v8 }
  0xfd   :  { %105 = dma.done.wait [#allocation3], 128  }
  0xfe   :  { %106 = vsyncadd [#allocation3], 4294967168 }
  0xff   :  { %76 = vsyncpa [#allocation3], 1 }

</bundles_post_ra>
